<compile_context>
chip_gen: v5e
topology: v5e:2x2
jax: 0.10.0
libtpu: 0.0.40
codegen_flags: <defaults>
</compile_context>

<pallas_src>
import functools

import jax
import jax.numpy as jnp
from jax.experimental import pallas as pl
from jax.experimental.pallas import tpu as pltpu

EPS = 1e-6


def _tpu_vmem_capacity_bytes():
    """Physical VMEM of the local chip; conservative v7x-sized default if unknown."""
    try:
        return int(pltpu.get_tpu_info().vmem_capacity_bytes)
    except Exception:
        return 64 << 20


def _resident_param_specs(shapes):
    """BlockSpecs for grid-invariant params (index map pinned to block (0,0)).

    Requests single buffering so the resident weight does not pay for a second
    VMEM copy; falls back to the default BlockSpec when unsupported.
    """
    idx = lambda i, s: (0, 0)
    try:
        specs = [pl.BlockSpec(shp, idx, pipeline_mode=pl.Buffered(1)) for shp in shapes]
        return specs, True
    except Exception:
        return [pl.BlockSpec(shp, idx) for shp in shapes], False


def _pick_tile_m(m, cap):
    """Pick a token-tile size that divides m exactly (no wrapper pad/slice).

    Only falls back to a ragged last tile (Pallas masks OOB rows on the store)
    when m has no usable multiple-of-8 divisor <= cap.
    """
    cap = max(8, (cap // 8) * 8)
    if m <= cap:
        half = m // 2
        if m % 2 == 0 and half % 8 == 0:
            return half, 2            # >=2 grid steps: dual-TC split + pipelining
        return m, 1                   # block == full dim, always legal
    t = cap
    while t >= 8:
        if m % t == 0:
            return t, m // t
        t -= 8
    t = cap
    return t, -(-m // t)              # ragged last tile (store-masked)


def residual_connection_kernel(seed_ref,            # scalar prefetch (SMEM)
                               x_ref, w_ref, b_ref, gamma_ref, beta_ref,
                               o_ref,
                               *, dropout_p, hidden, tile_m):
    x = x_ref[...].astype(jnp.float32)                       # (TM, H)

    # ---- LayerNorm (matches the module: unbiased std, eps added to the std) ----
    mean = jnp.mean(x, axis=-1, keepdims=True)
    diff = x - mean
    var = jnp.sum(diff * diff, axis=-1, keepdims=True) * (1.0 / max(hidden - 1, 1))
    # Reciprocal of the (TM,1) column runs on the EUP; only one TMxH multiply
    # remains on the VPU (instead of a full TMxH divide).
    inv = pl.reciprocal(jnp.sqrt(var) + EPS, approx=False)
    ln = gamma_ref[...] * (diff * inv) + beta_ref[...]

    # ---- sublayer: Linear(size, size) on the MXU (bf16 inputs by default,
    #      f32 accumulation) ----
    y = jnp.dot(ln.astype(w_ref.dtype), w_ref[...],
                preferred_element_type=jnp.float32) + b_ref[...]

    # ---- dropout (training semantics: keep w.p. 1-p, scale kept by 1/(1-p)) ----
    if dropout_p > 0.0:
        # Counter-based integer hash of the *global* element index so tiles get
        # decorrelated masks. Row/seed terms are mixed on a (TM,1) column; only
        # ~9 integer VALU ops run at full TMxH width (2-round finalizer).
        # TODO(synk): RNG stream differs from torch.nn.Dropout.
        tm_blk, h_cols = y.shape
        rows = jax.lax.broadcasted_iota(jnp.int32, (tm_blk, 1), 0).astype(jnp.uint32)
        cols = jax.lax.broadcasted_iota(jnp.int32, (1, h_cols), 1).astype(jnp.uint32)
        row0 = (pl.program_id(0) * tile_m).astype(jnp.uint32)
        seed_mix = seed_ref[0].astype(jnp.uint32) * jnp.uint32(0x9E3779B9)
        row_term = ((row0 + rows) * jnp.uint32(hidden)) ^ seed_mix      # (TM, 1)
        h = (row_term + cols) * jnp.uint32(0x85EBCA6B)
        h = (h ^ (h >> 16)) * jnp.uint32(0xC2B2AE35)
        h = h ^ (h >> 13)
        threshold = jnp.uint32(min(int(dropout_p * 4294967296.0), 4294967295))
        keep = h >= threshold
        scale = jnp.float32(1.0 / (1.0 - dropout_p))
        y = jnp.where(keep, y * scale, jnp.float32(0.0))

    # ---- residual add: re-read x from VMEM (do not keep the f32 tile live
    #      across the matmul; the reload is free, holding it forces spills) ----
    o_ref[...] = (x_ref[...].astype(jnp.float32) + y).astype(o_ref.dtype)


def residual_connection(x, w, b, gamma, beta, seed, dropout_p=0.1,
                        mxu_dtype=jnp.bfloat16):
    """x: (batch, seq, hidden); returns same shape/dtype.

    mxu_dtype=jnp.bfloat16 (default): native MXU rate with f32 accumulation and
    half the resident-weight VMEM footprint. Pass jnp.float32 for bit-accurate
    Linear math. For production, hidden should be a multiple of 128 so stores
    are lane-dense.
    """
    batch, seq_len, hidden = x.shape
    m = batch * seq_len
    x2 = x.reshape(m, hidden)                     # free reshape; no pad/slice copies

    w_in = w.astype(mxu_dtype)                    # (in, out)
    b2 = b.reshape(1, hidden).astype(jnp.float32)
    g2 = gamma.reshape(1, hidden).astype(jnp.float32)
    be2 = beta.reshape(1, hidden).astype(jnp.float32)
    seed_arr = jnp.asarray([seed], dtype=jnp.int32)

    resident_specs, single_buffered = _resident_param_specs(
        [(hidden, hidden), (1, hidden), (1, hidden), (1, hidden)])

    # ---- per-generation VMEM budget -> tile_m (128 MiB v5e/v6e, 64 MiB v7x) ----
    cap_bytes = _tpu_vmem_capacity_bytes()
    budget = (cap_bytes * 3) // 4                 # leave compiler headroom
    wbytes = jnp.dtype(mxu_dtype).itemsize
    xbytes = jnp.dtype(x.dtype).itemsize
    w_copies = 1 if single_buffered else 2
    resident_bytes = w_copies * (hidden * hidden * wbytes + 3 * hidden * 4)
    per_row_bytes = 2 * 2 * hidden * xbytes       # x + out tiles, double-buffered
    cap_tile = (budget - resident_bytes - (2 << 20)) // per_row_bytes
    cap_tile = int(min(max(cap_tile, 8), 1024))   # >~1K rows: diminishing returns
    tile_m, n_tiles = _pick_tile_m(m, cap_tile)
    # TODO(synk): for hidden so large that the resident weight alone exceeds
    # ~half of VMEM (H >~ 5K bf16 on v7x), W must be N-tiled via a second grid
    # axis; not implemented here.

    kernel = functools.partial(residual_connection_kernel,
                               dropout_p=float(dropout_p),
                               hidden=hidden, tile_m=tile_m)

    grid_spec = pltpu.PrefetchScalarGridSpec(
        num_scalar_prefetch=1,
        grid=(n_tiles,),
        in_specs=[pl.BlockSpec((tile_m, hidden), lambda i, s: (i, 0))] + resident_specs,
        out_specs=pl.BlockSpec((tile_m, hidden), lambda i, s: (i, 0)),
    )

    # VMEM hint: always >= the buffers this layout actually allocates, clamped
    # to this chip's physical VMEM.
    need = resident_bytes + 2 * 2 * tile_m * hidden * xbytes + (4 << 20)
    vmem_limit = int(min(max(need, 16 << 20), cap_bytes))

    out = pl.pallas_call(
        kernel,
        out_shape=jax.ShapeDtypeStruct((m, hidden), x.dtype),
        grid_spec=grid_spec,
        compiler_params=pltpu.CompilerParams(
            dimension_semantics=("parallel",),    # rows independent; 2x on v7x
            vmem_limit_bytes=vmem_limit),
    )(seed_arr, x2, w_in, b2, g2, be2)

    return out.reshape(batch, seq_len, hidden)


def reference_no_dropout(x, w, b, gamma, beta):
    """Pure-JAX reference of the module forward with dropout disabled (p=0)."""
    mean = jnp.mean(x, axis=-1, keepdims=True)
    diff = x - mean
    var = jnp.sum(diff * diff, axis=-1, keepdims=True) / (x.shape[-1] - 1)
    std = jnp.sqrt(var)
    y = gamma * diff / (std + EPS) + beta
    y = y @ w + b
    return x + y


if __name__ == "__main__":
    key = jax.random.PRNGKey(0)
    batch, seq_len, hidden = 2, 8, 32

    k_x, k_w, k_b = jax.random.split(key, 3)
    x = jax.random.normal(k_x, (batch, seq_len, hidden), dtype=jnp.float32)

    # Deterministic synthetic parameters (not a checkpoint).
    w = (jax.random.normal(k_w, (hidden, hidden), dtype=jnp.float32)
         * (1.0 / jnp.sqrt(hidden)))                 # sublayer Linear weight (in, out)
    b = jax.random.normal(k_b, (hidden,), dtype=jnp.float32) * 0.01
    gamma = jnp.ones((hidden,), dtype=jnp.float32)   # LayerNorm a_2 (torch.ones init)
    beta = jnp.ones((hidden,), dtype=jnp.float32)    # LayerNorm b_2 (module inits to torch.ones)

    ref = reference_no_dropout(x, w, b, gamma.reshape(1, 1, hidden),
                               beta.reshape(1, 1, hidden))

    # 1) Exact-path correctness check: f32 MXU inputs, dropout disabled.
    out_f32 = residual_connection(x, w, b, gamma, beta, seed=0, dropout_p=0.0,
                                  mxu_dtype=jnp.float32)
    jax.block_until_ready(out_f32)
    assert jnp.allclose(out_f32, ref, atol=1e-4, rtol=1e-4), "f32 path mismatch vs reference"

    # 2) Default (bf16 MXU) path, dropout disabled: looser tolerance for bf16 inputs.
    out_bf16 = residual_connection(x, w, b, gamma, beta, seed=0, dropout_p=0.0)
    jax.block_until_ready(out_bf16)
    assert jnp.allclose(out_bf16, ref, atol=5e-2, rtol=5e-2), "bf16 path mismatch vs reference"

    # 3) Training forward with dropout p=0.1 (bf16 default path).
    out = residual_connection(x, w, b, gamma, beta, seed=1234, dropout_p=0.1)
    jax.block_until_ready(out)
    assert out.shape == (batch, seq_len, hidden)
    assert bool(jnp.all(jnp.isfinite(out)))
    # Dropped positions have y == 0 exactly, so out == x there; expect ~10%.
    drop_frac = float(jnp.mean((out == x).astype(jnp.float32)))
    assert 0.01 < drop_frac < 0.35, f"unexpected dropout fraction {drop_frac}"

    print("KERNEL_OK")
</pallas_src>

<mosaic_0001>
module attributes {stable_mosaic.version = 11 : i64} {
  func.func @residual_connection_kernel(%arg0: i32, %arg1: memref<1xi32, #tpu.memory_space<smem>>, %arg2: memref<8x32xf32, #tpu.memory_space<vmem>>, %arg3: memref<32x32xf32, #tpu.memory_space<vmem>>, %arg4: memref<1x32xf32, #tpu.memory_space<vmem>>, %arg5: memref<1x32xf32, #tpu.memory_space<vmem>>, %arg6: memref<1x32xf32, #tpu.memory_space<vmem>>, %arg7: memref<8x32xf32, #tpu.memory_space<vmem>>) attributes {dimension_semantics = [#tpu.dimension_semantics<parallel>], iteration_bounds = array<i64: 2>, scalar_prefetch = 1 : i64, scratch_operands = 0 : i64, tpu.core_type = #tpu.core_type<tc>, window_params = [{transform_indices = @transform_0, window_bounds = array<i64: 8, 32>}, {pipeline_mode = #tpu.pipeline_mode<synchronous>, transform_indices = @transform_1, window_bounds = array<i64: 32, 32>}, {pipeline_mode = #tpu.pipeline_mode<synchronous>, transform_indices = @transform_2, window_bounds = array<i64: 1, 32>}, {pipeline_mode = #tpu.pipeline_mode<synchronous>, transform_indices = @transform_3, window_bounds = array<i64: 1, 32>}, {pipeline_mode = #tpu.pipeline_mode<synchronous>, transform_indices = @transform_4, window_bounds = array<i64: 1, 32>}, {transform_indices = @transform_5, window_bounds = array<i64: 8, 32>}]} {
    %c0 = arith.constant 0 : index
    %c0_0 = arith.constant 0 : index
    %0 = vector.load %arg2[%c0, %c0_0] : memref<8x32xf32, #tpu.memory_space<vmem>>, vector<8x32xf32>
    %cst = arith.constant dense<0.000000e+00> : vector<8xf32>
    %1 = vector.multi_reduction <add>, %0, %cst [1] : vector<8x32xf32> to vector<8xf32>
    %2 = vector.shape_cast %1 : vector<8xf32> to vector<8x1xf32>
    %cst_1 = arith.constant 3.200000e+01 : f32
    %3 = vector.broadcast %cst_1 : f32 to vector<8x1xf32>
    %4 = arith.divf %2, %3 : vector<8x1xf32>
    %5 = vector.broadcast %4 : vector<8x1xf32> to vector<8x32xf32>
    %6 = arith.subf %0, %5 : vector<8x32xf32>
    %7 = arith.mulf %6, %6 : vector<8x32xf32>
    %cst_2 = arith.constant dense<0.000000e+00> : vector<8xf32>
    %8 = vector.multi_reduction <add>, %7, %cst_2 [1] : vector<8x32xf32> to vector<8xf32>
    %9 = vector.shape_cast %8 : vector<8xf32> to vector<8x1xf32>
    %cst_3 = arith.constant 0.0322580636 : f32
    %10 = vector.broadcast %cst_3 : f32 to vector<8x1xf32>
    %11 = arith.mulf %9, %10 : vector<8x1xf32>
    %12 = math.sqrt %11 : vector<8x1xf32>
    %cst_4 = arith.constant 9.99999997E-7 : f32
    %13 = vector.broadcast %cst_4 : f32 to vector<8x1xf32>
    %14 = arith.addf %12, %13 : vector<8x1xf32>
    %15 = tpu.reciprocal %14 : vector<8x1xf32> -> vector<8x1xf32>
    %c0_5 = arith.constant 0 : index
    %c0_6 = arith.constant 0 : index
    %16 = vector.load %arg5[%c0_5, %c0_6] : memref<1x32xf32, #tpu.memory_space<vmem>>, vector<1x32xf32>
    %17 = vector.broadcast %15 : vector<8x1xf32> to vector<8x32xf32>
    %18 = arith.mulf %6, %17 : vector<8x32xf32>
    %19 = vector.broadcast %16 : vector<1x32xf32> to vector<8x32xf32>
    %20 = arith.mulf %19, %18 : vector<8x32xf32>
    %c0_7 = arith.constant 0 : index
    %c0_8 = arith.constant 0 : index
    %21 = vector.load %arg6[%c0_7, %c0_8] : memref<1x32xf32, #tpu.memory_space<vmem>>, vector<1x32xf32>
    %22 = vector.broadcast %21 : vector<1x32xf32> to vector<8x32xf32>
    %23 = arith.addf %20, %22 : vector<8x32xf32>
    %c0_9 = arith.constant 0 : index
    %c0_10 = arith.constant 0 : index
    %24 = vector.load %arg3[%c0_9, %c0_10] : memref<32x32xf32, #tpu.memory_space<vmem>>, vector<32x32xf32>
    %cst_11 = arith.constant dense<0.000000e+00> : vector<8x32xf32>
    %25 = tpu.matmul %23, %24, %cst_11 {dimension_numbers = #tpu.dot_dimension_numbers<[1], [0], [0], [1], [0, 0, 1, 1], [], []>} : vector<8x32xf32>, vector<32x32xf32>, vector<8x32xf32> -> vector<8x32xf32>
    %c0_12 = arith.constant 0 : index
    %c0_13 = arith.constant 0 : index
    %26 = vector.load %arg4[%c0_12, %c0_13] : memref<1x32xf32, #tpu.memory_space<vmem>>, vector<1x32xf32>
    %27 = vector.broadcast %26 : vector<1x32xf32> to vector<8x32xf32>
    %28 = arith.addf %25, %27 : vector<8x32xf32>
    %c0_14 = arith.constant 0 : index
    %c0_15 = arith.constant 0 : index
    %29 = vector.load %arg2[%c0_14, %c0_15] : memref<8x32xf32, #tpu.memory_space<vmem>>, vector<8x32xf32>
    %30 = arith.addf %29, %28 : vector<8x32xf32>
    %c0_16 = arith.constant 0 : index
    %c0_17 = arith.constant 0 : index
    %31 = vector.load %arg7[%c0_16, %c0_17] : memref<8x32xf32, #tpu.memory_space<vmem>>, vector<8x32xf32>
    tpu.vector_store %arg7[%c0_16, %c0_17], %30 {strides = array<i32>} : memref<8x32xf32, #tpu.memory_space<vmem>>, vector<8x32xf32>,
    return
  }
  func.func @transform_0(%arg0: i32, %arg1: memref<1xi32, #tpu.memory_space<smem>>) -> (i32, i32) {
    %c0_i32 = arith.constant 0 : i32
    %c0_i32_0 = arith.constant 0 : i32
    return %arg0, %c0_i32 : i32, i32
  }
  func.func @transform_1(%arg0: i32, %arg1: memref<1xi32, #tpu.memory_space<smem>>) -> (i32, i32) {
    %c0_i32 = arith.constant 0 : i32
    %c0_i32_0 = arith.constant 0 : i32
    %c0_i32_1 = arith.constant 0 : i32
    return %c0_i32, %c0_i32_0 : i32, i32
  }
  func.func @transform_2(%arg0: i32, %arg1: memref<1xi32, #tpu.memory_space<smem>>) -> (i32, i32) {
    %c0_i32 = arith.constant 0 : i32
    %c0_i32_0 = arith.constant 0 : i32
    %c0_i32_1 = arith.constant 0 : i32
    return %c0_i32, %c0_i32_0 : i32, i32
  }
  func.func @transform_3(%arg0: i32, %arg1: memref<1xi32, #tpu.memory_space<smem>>) -> (i32, i32) {
    %c0_i32 = arith.constant 0 : i32
    %c0_i32_0 = arith.constant 0 : i32
    %c0_i32_1 = arith.constant 0 : i32
    return %c0_i32, %c0_i32_0 : i32, i32
  }
  func.func @transform_4(%arg0: i32, %arg1: memref<1xi32, #tpu.memory_space<smem>>) -> (i32, i32) {
    %c0_i32 = arith.constant 0 : i32
    %c0_i32_0 = arith.constant 0 : i32
    %c0_i32_1 = arith.constant 0 : i32
    return %c0_i32, %c0_i32_0 : i32, i32
  }
  func.func @transform_5(%arg0: i32, %arg1: memref<1xi32, #tpu.memory_space<smem>>) -> (i32, i32) {
    %c0_i32 = arith.constant 0 : i32
    %c0_i32_0 = arith.constant 0 : i32
    return %arg0, %c0_i32 : i32, i32
  }
}

</mosaic_0001>

<bundles_post_ra>
// kernel: tpu_custom_call.1
= control target key start
LH: loop header
LB: loop body
LE: loop exit
PB: predicated region body
PF: predicated region fallthrough
CT: control target
= control target key end

     0   :  { %12 = vsyncpa [#allocation5], 0  ;;  %s860_s0 = inlined_call_operand.<no memory space> [shape: s32[1], index: 0, kind: input, shape index: {}]   ;;  %s861_s1 = inlined_call_operand.hbm [shape: f32[16,32], index: 1, kind: input, shape index: {}]   ;;  %s862_s2 = inlined_call_operand.hbm [shape: f32[32,32], index: 2, kind: input, shape index: {}]   ;;  %s863_s3 = inlined_call_operand.vmem [shape: f32[1,32], index: 3, kind: input, shape index: {}]   ;;  %s864_s4 = inlined_call_operand.vmem [shape: f32[1,32], index: 4, kind: input, shape index: {}]   ;;  %s865_s5 = inlined_call_operand.vmem [shape: f32[1,32], index: 5, kind: input, shape index: {}]   ;;  %s866_s6 = inlined_call_operand.hbm [shape: f32[16,32], index: 6, kind: output, shape index: {}]  }
   0x1   :  { %14 = vsyncpa [#allocation5 + $0x1], 0 }
   0x2   :  { %15 = vsyncpa [#allocation8], 0 }
   0x3   :  { %16 = vsyncpa [#allocation6], 0 }
   0x4   :  { %18 = vsyncpa [#allocation6 + $0x1], 0  ;;  %s702_s0 = smov 0   ;;  %s704_s21 = smov 0  }
   0x5   :  { %s706_s22 = smov 0   ;;  %s708_s23 = smov 0  }
   0x6 LB: > { %s176_s26 = sshll.u32 %s862_s2, 4  ;;  %s726_s27 = sadd.s32 4294967295, %s661_s23   ;;  %s661_s23 = sphi %s708_s23, %s876_s23   ;;  %s657_s22 = sphi %s706_s22, %s875_s22   ;;  %s653_s21 = sphi %s704_s21, %s874_s21   ;;  %s649_s0 = sphi %s702_s0, %s873_s0   ;;  %s177_s26 = int_to_ptr.hbm [resolvable:$true] %s176_s26 }
   0x7   : > { %p448_p0 = scmp.ge.s32.totalorder %s661_s23, 1  ;;  %p45_p1 = scmp.eq.s32.totalorder %s726_s27, 0 }
   0x8   : > { %p165_p2 = scmp.lt.s32.totalorder %s661_s23, 3  ;;  %s663_s29 = smov [#allocation7]  }
   0x9   : > { %s178_s30 = sshll.u32 %s663_s29, 4  ;;  %s664_s7 = smov 128   ;;  %s179_s30 = int_to_ptr.vmem [resolvable:$true] %s178_s30 }
   0xa   : > { %p731_p3 = pnand %p448_p0, %p165_p2  ;;  %s665_s8 = smov 8  }
   0xb   : > { %s447_s9 = sadd.s32 4294967294, %s661_s23   ;;  %s742_s10 = sadd.s32 1, %s661_s23  }
   0xc   : > { %p470_p4 = pneg %p731_p3  ;;  %s31_s11 = sadd.s32 1, %s657_s22 }
   0xd   : > { %s28_s12 = ssub.s32 %s661_s23, %s742_s10  ;;  %p38_p7 = scmp.ne.s32.totalorder %s657_s22, %s653_s21 }
   0xe   : > { %p471_p6 = pnand %p470_p4, %p45_p1  ;;  %p29_p8 = scmp.eq.s32.totalorder %s28_s12, 0 }
   0xf   : > { %p39_p9 = scmp.eq.s32.totalorder %s661_s23, 0  ;;  %p44_p10 = scmp.ne.s32.totalorder %s653_s21, %s649_s0 }
  0x10   : > { %473 = dma.hbm_to_vmem [thread:$0]  (!%p471_p6), %s177_s26, 512, %s179_s30, [#allocation8], %s664_s7, %s664_s7, %s665_s8  }
  0x11   : > { %p152_p11 = scmp.eq.s32.totalorder %s726_s27, 1  ;;  %p758_p12 = por %p45_p1, %p44_p10 }
  0x12   : > { %s754_s13 = scalar_select %p29_p8, %s657_s22, %s31_s11  }
  0x13   : > { %p762_p13 = por %p152_p11, %p38_p7  ;;  %p158_p0 = scmp.eq.s32.totalorder %s447_s9, 1 }
  0x14   : > { %p40_p2 = por %p39_p9, %p38_p7  ;;  %s201_s16 = sand.u32 1, %s657_s22  }
  0x15   : > { %p767_p4 = por %p158_p0, %p44_p10  ;;  %p483_p6 = scmp.lt.s32.totalorder %s661_s23, 2 }
  0x16   : > { %s451_s18 = sshll.u32 %s201_s16, 3  ;;  %s452_s19 = sshll.u32 %s661_s23, 3 }
  0x17   : > { %s209_s25 = scalar_lea.hbm %s861_s1, %s452_s19  ;;  %s205_s29 = scalar_lea.vmem [#allocation4], %s451_s18 }
  0x18   : > { %s211_s26 = sshll.u32 %s209_s25, 4  ;;  %s213_s30 = sshll.u32 %s205_s29, 4  ;;  %s212_s26 = int_to_ptr.hbm [resolvable:$true] %s211_s26  ;;  %s214_s30 = int_to_ptr.vmem [resolvable:$true] %s213_s30 }
  0x19   : > { %p776_p8 = pnand %p483_p6, %p40_p2  ;;  %s202_s8 = scalar_lea.sflag [#allocation5], %s201_s16 }
  0x1a   : > { %s561_s9 = sshra.s32 %s212_s26, 4  ;;  %s568_s18 = scalar_lea.hbm %s861_s1, 16  ;;  %s562_s9 = int_to_ptr.hbm [resolvable:$true] %s561_s9 }
  0x1b   : > { %s563_s11 = scalar_lea.hbm %s562_s9, 8  ;;  %p565_p9 = pneg %p776_p8 }
  0x1c   : > { %p564_p7 = scmp.ne.s32.totalorder %s562_s9, %s563_s11  ;;  %p569_p0 = scmp.lt.s32.totalorder %s562_s9, %s861_s1 }
  0x1d   : > { %p570_p2 = scmp.lt.s32.totalorder %s568_s18, %s563_s11 }
  0x1e   : > { %p566_p10 = pnand %p565_p9, %p564_p7 }
  0x1f   : > { %p571_p6 = por %p570_p2, %p569_p0 }
  0x20   : > { %p567_p11 = pneg %p566_p10 }
  0x22   : > { %p572_p5 = pnand %p571_p6, %p567_p11 }
  0x24   : > { %575 = shalt.err (!%p572_p5)
}
  0x25   : > { %477 = dma.hbm_to_vmem [thread:$0]  (!%p776_p8), %s212_s26, 128, %s214_s30, %s202_s8  }
  0x26   : > { %222 = sbr.rel (%p731_p3) target bundleno = 468 (0x1d4), region = 40  ;;  %s793_s16 = sand.u32 (!%p731_p3), 1, %s653_s21  }
  0x27   : > { %s454_s25 = sshll.u32 (!%p731_p3), %s793_s16, 3  ;;  %s225_s29 = scalar_lea.sflag (!%p731_p3), [#allocation5], %s793_s16 }
  0x28   : > { %s228_s9 = scalar_lea.vmem (!%p731_p3), [#allocation4], %s454_s25 }
  0x2b   : > { %636 = dma.done.wait (%p758_p12), %s225_s29, 128  }
  0x2c   : > { %638 = vsyncadd (%p758_p12), %s225_s29, 4294967168 }
  0x2d   : > { %640 = dma.done.wait (%p45_p1), [#allocation8], 512  }
  0x2e   : > { %642 = vsyncadd (%p45_p1), [#allocation8], 4294966784  ;;  %vm262_vm0 = vcmask 261120   ;;  %v807_v0 = vld [vmem:[%s228_s9] sm:$0xff]  ;;  %v666_v2 = vmov 32.0   ;;  %v319_v16 = vld [vmem:[#allocation7 + $0x8] sm:$0xff] }
  0x2f   : > { %v263_v1 = vsel %vm262_vm0, %v807_v0, 0.0  ;;  %525 = vrcp.f32 %v666_v2  ;;  %v321_v14 = vld [vmem:[#allocation7 + $0x18] sm:$0xff]  ;;  %v320_v15 = vld [vmem:[#allocation7 + $0x10] sm:$0xff]  ;;  %v318_v17 = vld [vmem:[#allocation7] sm:$0xff]  ;;  %s459_s7 = sshll.u32 %s726_s27, 3  ;;  %s260_s20 = scalar_lea.vmem [#allocation9], %s454_s25 }
  0x30   : > { %264 = vadd.xlane.f32.xlu0 %v263_v1  ;;  %341 = vmatpush.msra.mxu0 %v321_v14  ;;  %v522_v40 = vld [vmem:[%s864_s4] ss:$0 sm:$0xff]  ;;  %s362_s18 = scalar_lea.hbm %s866_s6, %s459_s7  ;;  %s364_s24 = sshll.u32 %s260_s20, 4  ;;  %s365_s24 = int_to_ptr.vmem [resolvable:$true] %s364_s24 }
  0x31   : > { %v523_v43 = vld [vmem:[%s865_s5] ss:$0 sm:$0xff]  ;;  %s366_s29 = sshll.u32 %s362_s18, 4  ;;  %s352_s27 = scalar_lea.sflag [#allocation6], %s793_s16  ;;  %s367_s29 = int_to_ptr.hbm [resolvable:$true] %s366_s29 }
  0x32   : > { %342 = vmatpush.msra.mxu0 %v320_v15  ;;  %v524_v46 = vld [vmem:[%s863_s3] ss:$0 sm:$0xff]  ;;  %s605_s9 = sshra.s32 %s367_s29, 4  ;;  %s611_s25 = scalar_lea.hbm %s866_s6, 16  ;;  %s606_s9 = int_to_ptr.hbm [resolvable:$true] %s605_s9 }
  0x33   : > { %s607_s28 = scalar_lea.hbm %s606_s9, 8  ;;  %p612_p12 = scmp.lt.s32.totalorder %s606_s9, %s866_s6 }
  0x34   : > { %343 = vmatpush.msra.mxu0 %v319_v16  ;;  %p608_p1 = scmp.ne.s32.totalorder %s606_s9, %s607_s28  ;;  %p613_p8 = scmp.lt.s32.totalorder %s611_s25, %s607_s28 }
  0x35   : > { %v526_v3 = vpop.eup %525 }
  0x36   : > { %v267_v4 = vmul.f32 32.0, %v526_v3  ;;  %vm271_vm1 = vweird.f32 %v526_v3  ;;  %344 = vmatpush.msra.mxu0 %v318_v17  ;;  %p609_p3 = pnand %p608_p1, %p762_p13  ;;  %p614_p7 = por %p613_p8, %p612_p12 }
  0x38   : > { %v268_v5 = vsub.f32 1.0, %v267_v4  ;;  %p610_p5 = pneg %p609_p3 }
  0x3a   : > { %v269_v6 = vmul.f32 %v526_v3, %v268_v5  ;;  %p615_p9 = pnand %p614_p7, %p610_p5 }
  0x3c   : > { %v270_v7 = vadd.f32 %v526_v3, %v269_v6 }
  0x3e   : > { %v272_v8 = vsel %vm271_vm1, %v526_v3, %v270_v7 }
  0xa3   : > { %v265_v9 = vpop.xlane.xlu0 %264 }
  0xa4   : > { %v273_v10 = vmul.f32 %v272_v8, %v265_v9 }
  0xa6   : > { %v274_v11 = vsub.f32 %v807_v0, %v273_v10 }
  0xa8   : > { %v275_v12 = vmul.f32 %v274_v11, %v274_v11 }
  0xaa   : > { %v276_v13 = vsel %vm262_vm0, %v275_v12, 0.0 }
  0xab   : > { %277 = vadd.xlane.f32.xlu0 %v276_v13 }
 0x11e   : > { %v278_v18 = vpop.xlane.xlu0 %277 }
 0x11f   : > { %v279_v19 = vmul.f32 0.032258064, %v278_v18 }
 0x121   : > { %527 = vrsqrt.f32 %v279_v19  ;;  %vm287_vm2 = vcmp.eq.f32.partialorder %v279_v19, inf  ;;  %v290_v27 = vand.u32 2147483648, %v279_v19  ;;  %vm289_vm3 = vcmp.eq.f32.partialorder %v279_v19, 0.0 }
 0x127   : > { %v528_v20 = vpop.eup %527 }
 0x128   : > { %v281_v21 = vmul.f32 %v528_v20, %v279_v19 }
 0x12a   : > { %v282_v22 = vmul.f32 %v528_v20, %v281_v21 }
 0x12c   : > { %v283_v23 = vmul.f32 0.5, %v282_v22 }
 0x12e   : > { %v284_v24 = vsub.f32 1.5, %v283_v23 }
 0x130   : > { %v285_v25 = vmul.f32 %v528_v20, %v284_v24 }
 0x132   : > { %v286_v26 = vmul.f32 %v285_v25, %v279_v19 }
 0x134   : > { %v288_v28 = vsel %vm287_vm2, %v279_v19, %v286_v26 }
 0x135   : > { %v291_v29 = vsel %vm289_vm3, %v290_v27, %v288_v28 }
 0x136   : > { %v292_v30 = vadd.f32 1e-06, %v291_v29 }
 0x138   : > { %529 = vrcp.f32 %v292_v30  ;;  %v304_v34 = vand.u32 2147483648, %v292_v30  ;;  %v302_v36 = vand.u32 2147483647, %v292_v30  ;;  %vm298_vm5 = vweird.f32 %v292_v30 }
 0x13a   : > { %v305_v38 = vor.u32 1.1754944e-38, %v304_v34  ;;  %vm303_vm7 = vcmp.eq.f32.partialorder %v302_v36, 8.507059e+37 }
 0x13e   : > { %v530_v31 = vpop.eup %529 }
 0x13f   : > { %v294_v32 = vmul.f32 %v530_v31, %v292_v30  ;;  %vm299_vm4 = vweird.f32 %v530_v31 }
 0x140   : > { %vm300_vm6 = vmor %vm298_vm5, %vm299_vm4 }
 0x141   : > { %v295_v33 = vsub.f32 1.0, %v294_v32 }
 0x143   : > { %v296_v35 = vmul.f32 %v530_v31, %v295_v33 }
 0x145   : > { %v297_v37 = vadd.f32 %v530_v31, %v296_v35 }
 0x147   : > { %v301_v39 = vsel %vm300_vm6, %v530_v31, %v297_v37 }
 0x148   : > { %v306_v41 = vsel %vm303_vm7, %v305_v38, %v301_v39 }
 0x149   : > { %v308_v42 = vmul.f32 %v306_v41, %v274_v11 }
 0x14b   : > { %v312_v44 = vmul.f32 %v522_v40, %v308_v42 }
 0x14d   : > { %v317_v45 = vadd.f32 %v523_v43, %v312_v44 }
 0x14f   : > { %457 = vmatmul.msk.f32.vlgmr.msra.gmra.mxu0 %vm262_vm0, %v317_v45 }
 0x1cc   : > { %v346_v47 = vpop.f32.mrf.mxu0 }
 0x1cd   : > { %v347_v48 = vadd.f32 %v524_v46, %v346_v47 }
 0x1cf   : > { %v349_v49 = vadd.f32 %v347_v48, %v807_v0 }
 0x1d1   : > { %350 = vst.msk [vmem:[%s260_s20] sm:$0xff] %vm262_vm0, %v349_v49 }
 0x1d2   : > { %618 = shalt.err (!%p615_p9)
}
 0x1d3   : > { %468 = dma.vmem_to_hbm [thread:$0]  (%p762_p13), %s365_s24, 128, %s367_s29, %s352_s27  }
 0x1d4 PF: > { %s378_s16 = sand.u32 1, %s649_s0   ;;  %p872_p10 = scmp.ge.s32.totalorder %s661_s23, 2 }
 0x1d5   : > { %s379_s8 = scalar_lea.sflag [#allocation6], %s378_s16 }
 0x1d6   : > { %p479_p11 = pnand %p872_p10, %p767_p4 }
 0x1d8   : > { %p480_p0 = pneg %p479_p11 }
 0x1da   : > { %644 = dma.done.wait (%p480_p0), %s379_s8, 128  }
 0x1db   : > { %646 = vsyncadd (%p480_p0), %s379_s8, 4294967168  ;;  %p21_p2 = scmp.ge.s32.totalorder %s742_s10, 4   ;;  %s873_s0 = smov %s653_s21 }
 0x1dc   : > { %s874_s21 = smov %s657_s22  ;;  %s875_s22 = smov %s754_s13 }
 0x1dd   : > { %s876_s23 = smov %s742_s10  ;;  %23 = sbr.rel (!%p21_p2) target bundleno = 6 (0x6), region = 89 }
 0x1e2   :  { %385 = vsyncpa [#allocation5], 1 }
 0x1e3   :  { %387 = vsyncpa [#allocation5 + $0x1], 1 }
 0x1e4   :  { %388 = vsyncpa [#allocation8], 1 }
 0x1e5   :  { %389 = vsyncpa [#allocation6], 1 }
 0x1e6   :  { %391 = vsyncpa [#allocation6 + $0x1], 1 }

</bundles_post_ra>
